<compile_context>
chip_gen: v7x
topology: tpu7x:2x2x1
jax: 0.10.0
libtpu: 0.0.40
codegen_flags: <defaults>
</compile_context>

<pallas_src>
import jax
import jax.numpy as jnp
from jax import lax
from jax.experimental import pallas as pl
from jax.experimental.pallas import tpu as pltpu

_LANE = 128


def _round_up(a, m):
    return ((a + m - 1) // m) * m


def _cdiv(a, b):
    return -(-a // b)


def make_value_mlp_kernel(matmul_dtype):
    """Kernel factory; `matmul_dtype` is the MXU operand dtype (f32 or bf16).

    Per-grid-step refs (weights resident, batch ends up on the lane axis):
      x_ref  : (TILE_B, state_dim)   input tile, native layout (no wrapper transpose)
      w1_ref : (h1, state_dim)       resident, already in matmul_dtype
      b1_ref : (h1, 1)               resident, f32
      w2_ref : (h2, h1)              resident, already in matmul_dtype
      b2_ref : (h2, 1)               resident, f32
      w3_ref : (h2, 1)               resident, f32 (head weights as a column)
      b3_ref : (1, 1)                resident, f32
      o_ref  : (1, TILE_B)           lane-dense value row
    """

    def kernel(x_ref, w1_ref, b1_ref, w2_ref, b2_ref, w3_ref, b3_ref, o_ref):
        # Only the per-step x tile is cast; resident weights were cast once outside.
        x = x_ref[...].astype(matmul_dtype)
        # Layer 1: contract x's feature axis directly (lhs @ rhs.T on the MXU) ->
        # feature-major (h1, TILE_B) with batch on lanes; f32 accumulate.
        h = lax.dot_general(
            w1_ref[...], x,
            dimension_numbers=(((1,), (1,)), ((), ())),
            preferred_element_type=jnp.float32,
        )
        h = jnp.maximum(h + b1_ref[...], 0.0)
        # Layer 2: (h2, h1) @ (h1, TILE_B); bias/ReLU stay f32.
        h = jnp.dot(w2_ref[...], h.astype(matmul_dtype),
                    preferred_element_type=jnp.float32)
        h = jnp.maximum(h + b2_ref[...], 0.0)
        # Value head (N=1): VPU broadcast-multiply + sublane (XLU) reduce yields a
        # lane-dense (1, TILE_B) row directly. (At h2>=1024 & TILE_B>=2048 a
        # (1,h2)@(h2,TILE_B) MXU dot may win; benchmark per bundle dump.)
        v = jnp.sum(h * w3_ref[...], axis=0, keepdims=True) + b3_ref[...]
        o_ref[...] = v.astype(o_ref.dtype)

    return kernel


def reinforce_value_forward(x, params, *, matmul_dtype=jnp.float32,
                            tile_b_max=2048, min_num_tiles=2):
    """Pallas wrapper. Mirrors PyTorch forward (unsqueezes 1-D input). Returns [B, 1].

    matmul_dtype: jnp.bfloat16 on v6e/v7x halves weight DMA / resident VMEM and hits
    MXU peak (accumulation stays f32); f32 default keeps exact parity with PyTorch.
    On v7x do NOT attempt int8 weights (bf16/fp8 MXU only); bf16 is the portable path.
    min_num_tiles: >=2 keeps both v7x TensorCores busy when the batch allows;
    harmless (~0.35 us) on single-TC v5e/v6e.
    """
    if x.ndim == 1:
        x = x[None, :]
    w1, b1, w2, b2, w3, b3 = params
    B, state_dim = x.shape
    h1_dim = w1.shape[0]
    h2_dim = w2.shape[0]

    # ---- Batch tiling: tile_b is forced to a multiple of 128 (lane width). ----
    b_pad0 = _round_up(B, _LANE)
    tile_cap = max(_LANE, (int(tile_b_max) // _LANE) * _LANE)
    num_tiles = max(_cdiv(b_pad0, tile_cap),
                    max(1, min(int(min_num_tiles), b_pad0 // _LANE)))
    tile_b = _round_up(_cdiv(b_pad0, num_tiles), _LANE)
    b_pad = tile_b * num_tiles
    assert tile_b % _LANE == 0 and b_pad % tile_b == 0

    # ---- One-time wrapper-side layout / dtype plumbing (no x transpose). ----
    xp = x if b_pad == B else jnp.pad(x, ((0, b_pad - B), (0, 0)))
    w1m = w1.astype(matmul_dtype)                       # cast ONCE, not per grid step
    w2m = w2.astype(matmul_dtype)
    b1c = b1.reshape(h1_dim, 1).astype(jnp.float32)
    b2c = b2.reshape(h2_dim, 1).astype(jnp.float32)
    w3c = w3.reshape(1, h2_dim).T.astype(jnp.float32)   # (h2, 1) column for VPU reduce
    b3c = b3.reshape(1, 1).astype(jnp.float32)

    # ---- Cost estimate + explicit VMEM budget (only raised when actually needed). ----
    flops = 2 * b_pad * (state_dim * h1_dim + h1_dim * h2_dim + h2_dim)
    bytes_accessed = int(
        xp.size * xp.dtype.itemsize
        + w1m.size * w1m.dtype.itemsize + w2m.size * w2m.dtype.itemsize
        + 4 * (h1_dim + 2 * h2_dim + 1)
        + 4 * b_pad
    )
    weight_bytes = int(w1m.size * w1m.dtype.itemsize + w2m.size * w2m.dtype.itemsize
                       + 4 * (h1_dim + 2 * h2_dim + 1))
    step_bytes = 4 * tile_b * state_dim + 4 * tile_b
    vmem_need = 2 * weight_bytes + 2 * step_bytes       # worst case: double-buffered
    cp_kwargs = dict(dimension_semantics=("parallel",))
    if vmem_need + (4 << 20) > (32 << 20):
        cp_kwargs["vmem_limit_bytes"] = int(vmem_need + (8 << 20))
    compiler_params = pltpu.CompilerParams(**cp_kwargs)

    kernel = make_value_mlp_kernel(matmul_dtype)

    def _const_spec(shape, single_buffer):
        # Constant index_map -> block never changes -> VMEM-resident across steps.
        if single_buffer:
            return pl.BlockSpec(shape, lambda i: (0, 0), pipeline_mode=pl.Buffered(1))
        return pl.BlockSpec(shape, lambda i: (0, 0))

    def _run(single_buffer_weights):
        in_specs = [
            pl.BlockSpec((tile_b, state_dim), lambda i: (i, 0)),   # new x slab per step
            _const_spec(w1m.shape, single_buffer_weights),
            _const_spec((h1_dim, 1), single_buffer_weights),
            _const_spec(w2m.shape, single_buffer_weights),
            _const_spec((h2_dim, 1), single_buffer_weights),
            _const_spec((h2_dim, 1), single_buffer_weights),
            _const_spec((1, 1), single_buffer_weights),
        ]
        return pl.pallas_call(
            kernel,
            out_shape=jax.ShapeDtypeStruct((1, b_pad), jnp.float32),
            grid=(num_tiles,),
            in_specs=in_specs,
            out_specs=pl.BlockSpec((1, tile_b), lambda i: (0, i)),
            compiler_params=compiler_params,
            cost_estimate=pl.CostEstimate(
                flops=flops, transcendentals=0, bytes_accessed=bytes_accessed),
        )(xp, w1m, b1c, w2m, b2c, w3c, b3c)

    try:
        out = _run(True)            # single-buffered resident weights (saves VMEM)
    except Exception:
        out = _run(False)           # fallback if pipeline_mode/Buffered(1) unsupported

    # Un-pad and return in the PyTorch shape [B, 1].
    return out[0, :B].reshape(B, 1)


def init_params(key, state_dim, hidden_sizes):
    """Deterministic init matching nn.Linear's U(-1/sqrt(fan_in), 1/sqrt(fan_in)).
    Weights stored in PyTorch layout [out, in]; biases [out].
    (For MXU efficiency at realistic sizes, prefer hidden sizes that are multiples
    of 256 on v6e/v7x, 128 on v5e; only layer 2 can approach MXU peak since layer 1's
    K=state_dim always under-fills the array.)"""
    dims = [state_dim] + list(hidden_sizes) + [1]
    params = []
    for i in range(len(dims) - 1):
        fan_in, fan_out = dims[i], dims[i + 1]
        key, kw, kb = jax.random.split(key, 3)
        bound = 1.0 / (float(fan_in) ** 0.5)
        w = jax.random.uniform(kw, (fan_out, fan_in), jnp.float32, -bound, bound)
        b = jax.random.uniform(kb, (fan_out,), jnp.float32, -bound, bound)
        params.extend([w, b])
    return tuple(params)


def reference_forward(x, params):
    """Pure-JAX reference (PyTorch semantics) for correctness check."""
    if x.ndim == 1:
        x = x[None, :]
    w1, b1, w2, b2, w3, b3 = params
    h = jnp.maximum(x @ w1.T + b1, 0.0)
    h = jnp.maximum(h @ w2.T + b2, 0.0)
    return h @ w3.T + b3


if __name__ == "__main__":
    key = jax.random.PRNGKey(0)

    batch = 8
    state_dim = 16
    hidden_sizes = [32, 32]  # stand-in for REINFORCE_CONFIG['hidden_units']

    key, kx, kx2, kp = jax.random.split(key, 4)
    x = jax.random.normal(kx, (batch, state_dim), jnp.float32)
    params = init_params(kp, state_dim, hidden_sizes)
    ref = reference_forward(x, params)

    # 1) f32 path: exact parity with the PyTorch forward.
    value = reinforce_value_forward(x, params)
    jax.block_until_ready(value)
    assert value.shape == (batch, 1), value.shape
    assert jnp.allclose(value, ref, atol=1e-5, rtol=1e-5), (
        f"max abs err {jnp.max(jnp.abs(value - ref))}"
    )

    # 2) 1-D input path (PyTorch unsqueeze semantics).
    v1 = reinforce_value_forward(x[0], params)
    jax.block_until_ready(v1)
    assert v1.shape == (1, 1)
    assert jnp.allclose(v1, ref[:1], atol=1e-5, rtol=1e-5)

    # 3) Multi-tile path (batch padding + >=2 grid steps for the v7x megacore split).
    x_big = jax.random.normal(kx2, (300, state_dim), jnp.float32)
    v_big = reinforce_value_forward(x_big, params, tile_b_max=256)
    jax.block_until_ready(v_big)
    ref_big = reference_forward(x_big, params)
    assert v_big.shape == (300, 1)
    assert jnp.allclose(v_big, ref_big, atol=1e-5, rtol=1e-5), (
        f"max abs err {jnp.max(jnp.abs(v_big - ref_big))}"
    )

    # 4) bf16 matmul path (wrapper pre-casts weights once); looser tolerance expected.
    v_bf16 = reinforce_value_forward(x, params, matmul_dtype=jnp.bfloat16)
    jax.block_until_ready(v_bf16)
    assert jnp.allclose(v_bf16, ref, atol=1e-1, rtol=1e-1), (
        f"max abs err {jnp.max(jnp.abs(v_bf16 - ref))}"
    )

    print("KERNEL_OK")
</pallas_src>

<mosaic_0001>
module attributes {stable_mosaic.version = 11 : i64} {
  func.func @kernel(%arg0: i32, %arg1: memref<128x16xf32, #tpu.memory_space<vmem>>, %arg2: memref<32x16xf32, #tpu.memory_space<vmem>>, %arg3: memref<32x1xf32, #tpu.memory_space<vmem>>, %arg4: memref<32x32xf32, #tpu.memory_space<vmem>>, %arg5: memref<32x1xf32, #tpu.memory_space<vmem>>, %arg6: memref<32x1xf32, #tpu.memory_space<vmem>>, %arg7: memref<1x1xf32, #tpu.memory_space<vmem>>, %arg8: memref<1x128xf32, #tpu.memory_space<vmem>>) attributes {dimension_semantics = [#tpu.dimension_semantics<parallel>], iteration_bounds = array<i64: 1>, scalar_prefetch = 0 : i64, scratch_operands = 0 : i64, tpu.core_type = #tpu.core_type<tc>, window_params = [{transform_indices = @transform_0, window_bounds = array<i64: 128, 16>}, {pipeline_mode = #tpu.pipeline_mode<synchronous>, transform_indices = @transform_1, window_bounds = array<i64: 32, 16>}, {pipeline_mode = #tpu.pipeline_mode<synchronous>, transform_indices = @transform_2, window_bounds = array<i64: 32, 1>}, {pipeline_mode = #tpu.pipeline_mode<synchronous>, transform_indices = @transform_3, window_bounds = array<i64: 32, 32>}, {pipeline_mode = #tpu.pipeline_mode<synchronous>, transform_indices = @transform_4, window_bounds = array<i64: 32, 1>}, {pipeline_mode = #tpu.pipeline_mode<synchronous>, transform_indices = @transform_5, window_bounds = array<i64: 32, 1>}, {pipeline_mode = #tpu.pipeline_mode<synchronous>, transform_indices = @transform_6, window_bounds = array<i64: 1, 1>}, {transform_indices = @transform_7, window_bounds = array<i64: 1, 128>}]} {
    %c0 = arith.constant 0 : index
    %c0_0 = arith.constant 0 : index
    %0 = vector.load %arg1[%c0, %c0_0] : memref<128x16xf32, #tpu.memory_space<vmem>>, vector<128x16xf32>
    %c0_1 = arith.constant 0 : index
    %c0_2 = arith.constant 0 : index
    %1 = vector.load %arg2[%c0_1, %c0_2] : memref<32x16xf32, #tpu.memory_space<vmem>>, vector<32x16xf32>
    %cst = arith.constant dense<0.000000e+00> : vector<32x128xf32>
    %2 = tpu.matmul %1, %0, %cst {dimension_numbers = #tpu.dot_dimension_numbers<[1], [1], [0], [0], [0, 0, 1, 0], [], []>} : vector<32x16xf32>, vector<128x16xf32>, vector<32x128xf32> -> vector<32x128xf32>
    %c0_3 = arith.constant 0 : index
    %c0_4 = arith.constant 0 : index
    %3 = vector.load %arg3[%c0_3, %c0_4] : memref<32x1xf32, #tpu.memory_space<vmem>>, vector<32x1xf32>
    %4 = vector.broadcast %3 : vector<32x1xf32> to vector<32x128xf32>
    %5 = arith.addf %2, %4 : vector<32x128xf32>
    %cst_5 = arith.constant 0.000000e+00 : f32
    %6 = vector.broadcast %cst_5 : f32 to vector<32x128xf32>
    %7 = arith.maximumf %5, %6 : vector<32x128xf32>
    %c0_6 = arith.constant 0 : index
    %c0_7 = arith.constant 0 : index
    %8 = vector.load %arg4[%c0_6, %c0_7] : memref<32x32xf32, #tpu.memory_space<vmem>>, vector<32x32xf32>
    %cst_8 = arith.constant dense<0.000000e+00> : vector<32x128xf32>
    %9 = tpu.matmul %8, %7, %cst_8 {dimension_numbers = #tpu.dot_dimension_numbers<[1], [0], [0], [1], [0, 0, 1, 1], [], []>} : vector<32x32xf32>, vector<32x128xf32>, vector<32x128xf32> -> vector<32x128xf32>
    %c0_9 = arith.constant 0 : index
    %c0_10 = arith.constant 0 : index
    %10 = vector.load %arg5[%c0_9, %c0_10] : memref<32x1xf32, #tpu.memory_space<vmem>>, vector<32x1xf32>
    %11 = vector.broadcast %10 : vector<32x1xf32> to vector<32x128xf32>
    %12 = arith.addf %9, %11 : vector<32x128xf32>
    %cst_11 = arith.constant 0.000000e+00 : f32
    %13 = vector.broadcast %cst_11 : f32 to vector<32x128xf32>
    %14 = arith.maximumf %12, %13 : vector<32x128xf32>
    %c0_12 = arith.constant 0 : index
    %c0_13 = arith.constant 0 : index
    %15 = vector.load %arg6[%c0_12, %c0_13] : memref<32x1xf32, #tpu.memory_space<vmem>>, vector<32x1xf32>
    %16 = vector.broadcast %15 : vector<32x1xf32> to vector<32x128xf32>
    %17 = arith.mulf %14, %16 : vector<32x128xf32>
    %cst_14 = arith.constant dense<0.000000e+00> : vector<128xf32>
    %18 = vector.multi_reduction <add>, %17, %cst_14 [0] : vector<32x128xf32> to vector<128xf32>
    %19 = vector.shape_cast %18 : vector<128xf32> to vector<1x128xf32>
    %c0_15 = arith.constant 0 : index
    %c0_16 = arith.constant 0 : index
    %20 = vector.load %arg7[%c0_15, %c0_16] : memref<1x1xf32, #tpu.memory_space<vmem>>, vector<1x1xf32>
    %21 = vector.broadcast %20 : vector<1x1xf32> to vector<1x128xf32>
    %22 = arith.addf %19, %21 : vector<1x128xf32>
    %c0_17 = arith.constant 0 : index
    %c0_18 = arith.constant 0 : index
    %23 = vector.load %arg8[%c0_17, %c0_18] : memref<1x128xf32, #tpu.memory_space<vmem>>, vector<1x128xf32>
    tpu.vector_store %arg8[%c0_17, %c0_18], %22 {strides = array<i32>} : memref<1x128xf32, #tpu.memory_space<vmem>>, vector<1x128xf32>,
    return
  }
  func.func @transform_0(%arg0: i32) -> (i32, i32) {
    %c0_i32 = arith.constant 0 : i32
    %c0_i32_0 = arith.constant 0 : i32
    return %arg0, %c0_i32 : i32, i32
  }
  func.func @transform_1(%arg0: i32) -> (i32, i32) {
    %c0_i32 = arith.constant 0 : i32
    %c0_i32_0 = arith.constant 0 : i32
    %c0_i32_1 = arith.constant 0 : i32
    return %c0_i32, %c0_i32_0 : i32, i32
  }
  func.func @transform_2(%arg0: i32) -> (i32, i32) {
    %c0_i32 = arith.constant 0 : i32
    %c0_i32_0 = arith.constant 0 : i32
    %c0_i32_1 = arith.constant 0 : i32
    return %c0_i32, %c0_i32_0 : i32, i32
  }
  func.func @transform_3(%arg0: i32) -> (i32, i32) {
    %c0_i32 = arith.constant 0 : i32
    %c0_i32_0 = arith.constant 0 : i32
    %c0_i32_1 = arith.constant 0 : i32
    return %c0_i32, %c0_i32_0 : i32, i32
  }
  func.func @transform_4(%arg0: i32) -> (i32, i32) {
    %c0_i32 = arith.constant 0 : i32
    %c0_i32_0 = arith.constant 0 : i32
    %c0_i32_1 = arith.constant 0 : i32
    return %c0_i32, %c0_i32_0 : i32, i32
  }
  func.func @transform_5(%arg0: i32) -> (i32, i32) {
    %c0_i32 = arith.constant 0 : i32
    %c0_i32_0 = arith.constant 0 : i32
    %c0_i32_1 = arith.constant 0 : i32
    return %c0_i32, %c0_i32_0 : i32, i32
  }
  func.func @transform_6(%arg0: i32) -> (i32, i32) {
    %c0_i32 = arith.constant 0 : i32
    %c0_i32_0 = arith.constant 0 : i32
    %c0_i32_1 = arith.constant 0 : i32
    return %c0_i32, %c0_i32_0 : i32, i32
  }
  func.func @transform_7(%arg0: i32) -> (i32, i32) {
    %c0_i32 = arith.constant 0 : i32
    %c0_i32_0 = arith.constant 0 : i32
    return %c0_i32, %arg0 : i32, i32
  }
}

module attributes {stable_mosaic.version = 11 : i64} {
  func.func @kernel(%arg0: i32, %arg1: memref<128x16xf32, #tpu.memory_space<vmem>>, %arg2: memref<32x16xf32, #tpu.memory_space<vmem>>, %arg3: memref<32x1xf32, #tpu.memory_space<vmem>>, %arg4: memref<32x32xf32, #tpu.memory_space<vmem>>, %arg5: memref<32x1xf32, #tpu.memory_space<vmem>>, %arg6: memref<32x1xf32, #tpu.memory_space<vmem>>, %arg7: memref<1x1xf32, #tpu.memory_space<vmem>>, %arg8: memref<1x128xf32, #tpu.memory_space<vmem>>) attributes {dimension_semantics = [#tpu.dimension_semantics<parallel>], iteration_bounds = array<i64: 1>, scalar_prefetch = 0 : i64, scratch_operands = 0 : i64, tpu.core_type = #tpu.core_type<tc>, window_params = [{transform_indices = @transform_0, window_bounds = array<i64: 128, 16>}, {pipeline_mode = #tpu.pipeline_mode<synchronous>, transform_indices = @transform_1, window_bounds = array<i64: 32, 16>}, {pipeline_mode = #tpu.pipeline_mode<synchronous>, transform_indices = @transform_2, window_bounds = array<i64: 32, 1>}, {pipeline_mode = #tpu.pipeline_mode<synchronous>, transform_indices = @transform_3, window_bounds = array<i64: 32, 32>}, {pipeline_mode = #tpu.pipeline_mode<synchronous>, transform_indices = @transform_4, window_bounds = array<i64: 32, 1>}, {pipeline_mode = #tpu.pipeline_mode<synchronous>, transform_indices = @transform_5, window_bounds = array<i64: 32, 1>}, {pipeline_mode = #tpu.pipeline_mode<synchronous>, transform_indices = @transform_6, window_bounds = array<i64: 1, 1>}, {transform_indices = @transform_7, window_bounds = array<i64: 1, 128>}]} {
    %c0 = arith.constant 0 : index
    %c0_0 = arith.constant 0 : index
    %0 = vector.load %arg1[%c0, %c0_0] : memref<128x16xf32, #tpu.memory_space<vmem>>, vector<128x16xf32>
    %c0_1 = arith.constant 0 : index
    %c0_2 = arith.constant 0 : index
    %1 = vector.load %arg2[%c0_1, %c0_2] : memref<32x16xf32, #tpu.memory_space<vmem>>, vector<32x16xf32>
    %cst = arith.constant dense<0.000000e+00> : vector<32x128xf32>
    %2 = tpu.matmul %1, %0, %cst {dimension_numbers = #tpu.dot_dimension_numbers<[1], [1], [0], [0], [0, 0, 1, 0], [], []>} : vector<32x16xf32>, vector<128x16xf32>, vector<32x128xf32> -> vector<32x128xf32>
    %c0_3 = arith.constant 0 : index
    %c0_4 = arith.constant 0 : index
    %3 = vector.load %arg3[%c0_3, %c0_4] : memref<32x1xf32, #tpu.memory_space<vmem>>, vector<32x1xf32>
    %4 = vector.broadcast %3 : vector<32x1xf32> to vector<32x128xf32>
    %5 = arith.addf %2, %4 : vector<32x128xf32>
    %cst_5 = arith.constant 0.000000e+00 : f32
    %6 = vector.broadcast %cst_5 : f32 to vector<32x128xf32>
    %7 = arith.maximumf %5, %6 : vector<32x128xf32>
    %c0_6 = arith.constant 0 : index
    %c0_7 = arith.constant 0 : index
    %8 = vector.load %arg4[%c0_6, %c0_7] : memref<32x32xf32, #tpu.memory_space<vmem>>, vector<32x32xf32>
    %cst_8 = arith.constant dense<0.000000e+00> : vector<32x128xf32>
    %9 = tpu.matmul %8, %7, %cst_8 {dimension_numbers = #tpu.dot_dimension_numbers<[1], [0], [0], [1], [0, 0, 1, 1], [], []>} : vector<32x32xf32>, vector<32x128xf32>, vector<32x128xf32> -> vector<32x128xf32>
    %c0_9 = arith.constant 0 : index
    %c0_10 = arith.constant 0 : index
    %10 = vector.load %arg5[%c0_9, %c0_10] : memref<32x1xf32, #tpu.memory_space<vmem>>, vector<32x1xf32>
    %11 = vector.broadcast %10 : vector<32x1xf32> to vector<32x128xf32>
    %12 = arith.addf %9, %11 : vector<32x128xf32>
    %cst_11 = arith.constant 0.000000e+00 : f32
    %13 = vector.broadcast %cst_11 : f32 to vector<32x128xf32>
    %14 = arith.maximumf %12, %13 : vector<32x128xf32>
    %c0_12 = arith.constant 0 : index
    %c0_13 = arith.constant 0 : index
    %15 = vector.load %arg6[%c0_12, %c0_13] : memref<32x1xf32, #tpu.memory_space<vmem>>, vector<32x1xf32>
    %16 = vector.broadcast %15 : vector<32x1xf32> to vector<32x128xf32>
    %17 = arith.mulf %14, %16 : vector<32x128xf32>
    %cst_14 = arith.constant dense<0.000000e+00> : vector<128xf32>
    %18 = vector.multi_reduction <add>, %17, %cst_14 [0] : vector<32x128xf32> to vector<128xf32>
    %19 = vector.shape_cast %18 : vector<128xf32> to vector<1x128xf32>
    %c0_15 = arith.constant 0 : index
    %c0_16 = arith.constant 0 : index
    %20 = vector.load %arg7[%c0_15, %c0_16] : memref<1x1xf32, #tpu.memory_space<vmem>>, vector<1x1xf32>
    %21 = vector.broadcast %20 : vector<1x1xf32> to vector<1x128xf32>
    %22 = arith.addf %19, %21 : vector<1x128xf32>
    %c0_17 = arith.constant 0 : index
    %c0_18 = arith.constant 0 : index
    %23 = vector.load %arg8[%c0_17, %c0_18] : memref<1x128xf32, #tpu.memory_space<vmem>>, vector<1x128xf32>
    tpu.vector_store %arg8[%c0_17, %c0_18], %22 {strides = array<i32>} : memref<1x128xf32, #tpu.memory_space<vmem>>, vector<1x128xf32>,
    return
  }
  func.func @transform_0(%arg0: i32) -> (i32, i32) {
    %c0_i32 = arith.constant 0 : i32
    %c0_i32_0 = arith.constant 0 : i32
    return %arg0, %c0_i32 : i32, i32
  }
  func.func @transform_1(%arg0: i32) -> (i32, i32) {
    %c0_i32 = arith.constant 0 : i32
    %c0_i32_0 = arith.constant 0 : i32
    %c0_i32_1 = arith.constant 0 : i32
    return %c0_i32, %c0_i32_0 : i32, i32
  }
  func.func @transform_2(%arg0: i32) -> (i32, i32) {
    %c0_i32 = arith.constant 0 : i32
    %c0_i32_0 = arith.constant 0 : i32
    %c0_i32_1 = arith.constant 0 : i32
    return %c0_i32, %c0_i32_0 : i32, i32
  }
  func.func @transform_3(%arg0: i32) -> (i32, i32) {
    %c0_i32 = arith.constant 0 : i32
    %c0_i32_0 = arith.constant 0 : i32
    %c0_i32_1 = arith.constant 0 : i32
    return %c0_i32, %c0_i32_0 : i32, i32
  }
  func.func @transform_4(%arg0: i32) -> (i32, i32) {
    %c0_i32 = arith.constant 0 : i32
    %c0_i32_0 = arith.constant 0 : i32
    %c0_i32_1 = arith.constant 0 : i32
    return %c0_i32, %c0_i32_0 : i32, i32
  }
  func.func @transform_5(%arg0: i32) -> (i32, i32) {
    %c0_i32 = arith.constant 0 : i32
    %c0_i32_0 = arith.constant 0 : i32
    %c0_i32_1 = arith.constant 0 : i32
    return %c0_i32, %c0_i32_0 : i32, i32
  }
  func.func @transform_6(%arg0: i32) -> (i32, i32) {
    %c0_i32 = arith.constant 0 : i32
    %c0_i32_0 = arith.constant 0 : i32
    %c0_i32_1 = arith.constant 0 : i32
    return %c0_i32, %c0_i32_0 : i32, i32
  }
  func.func @transform_7(%arg0: i32) -> (i32, i32) {
    %c0_i32 = arith.constant 0 : i32
    %c0_i32_0 = arith.constant 0 : i32
    return %c0_i32, %arg0 : i32, i32
  }
}

</mosaic_0001>

<bundles_post_ra>
// kernel: tpu_custom_call.1
= control target key start
LH: loop header
LB: loop body
LE: loop exit
PB: predicated region body
PF: predicated region fallthrough
CT: control target
= control target key end

     0   :  { %s815_s0 = inlined_call_operand.vmem [shape: f32[128,16], index: 0, kind: input, shape index: {}]   ;;  %s816_s1 = inlined_call_operand.vmem [shape: f32[32,16], index: 1, kind: input, shape index: {}]   ;;  %s817_s2 = inlined_call_operand.vmem [shape: f32[32,1], index: 2, kind: input, shape index: {}]   ;;  %s818_s3 = inlined_call_operand.vmem [shape: f32[32,32], index: 3, kind: input, shape index: {}]   ;;  %s819_s4 = inlined_call_operand.vmem [shape: f32[32,1], index: 4, kind: input, shape index: {}]   ;;  %s820_s5 = inlined_call_operand.vmem [shape: f32[32,1], index: 5, kind: input, shape index: {}]   ;;  %s821_s6 = inlined_call_operand.<no memory space> [shape: f32[1,1], index: 6, kind: input, shape index: {}]   ;;  %s822_s7 = inlined_call_operand.hbm [shape: f32[1,128], index: 7, kind: output, shape index: {}]  }
   0x1   :  { %v12_v0 = vstv %s821_s6 }
   0x2   :  { %13 = vst [vmem:[#allocation2] sm:$0x1] %v12_v0 }
   0x3   :  { %v29_v1 = vld [vmem:[%s815_s0] sm:$0xff]  ;;  %v30_v2 = vld [vmem:[%s815_s0 + $0x8] sm:$0xff]  ;;  %vm73_vm0 = vcmask 130048   ;;  %v31_v3 = vld [vmem:[%s815_s0 + $0x10] sm:$0xff]  ;;  %v604_v7 = vmov 0  }
   0x4   :  { %v520_v4 = vpack.c.bf16 %v30_v2, %v29_v1  ;;  %vm660_vm1 = vmpackc.low %vm73_vm0, %vm73_vm0  ;;  %v32_v6 = vld [vmem:[%s815_s0 + $0x18] sm:$0xff]  ;;  %578 = vset.pattern.permute.xlu0 %v604_v7  ;;  %579 = vset.pattern.permute.xlu1 %v604_v7  ;;  %v45_v9 = vld [vmem:[%s816_s1] sm:$0xff] }
   0x5   :  { %v526_v8 = vpack.c.bf16 %v32_v6, %v31_v3  ;;  %v33_v10 = vld [vmem:[%s815_s0 + $0x20] sm:$0xff]  ;;  %v34_v11 = vld [vmem:[%s815_s0 + $0x28] sm:$0xff]  ;;  %500 = vmatprep.mubr.msk.f32.mxu0 %vm73_vm0, %v45_v9  ;;  %v51_v13 = vld [vmem:[%s817_s2 + $0x10] sm:$0xff] }
   0x6   :  { %522 = vmatprep.subr.msk.bf16.mxu0 %vm660_vm1, %v520_v4  ;;  %v49_v12 = vld [vmem:[%s817_s2] sm:$0xff]  ;;  %65 = vperm.xlu1 %579, %v51_v13   ;;  %v532_v14 = vpack.c.bf16 %v34_v11, %v33_v10  ;;  %v50_v15 = vld [vmem:[%s817_s2 + $0x8] sm:$0xff]  ;;  %v52_v16 = vld [vmem:[%s817_s2 + $0x18] sm:$0xff] }
   0x7   :  { %525 = vmatpush3.bf16.xpose.msk.msra.mxu0 %vm660_vm1, %v520_v4  ;;  %55 = vperm.xlu0 %578, %v49_v12  }
   0x8   :  { %528 = vmatprep.subr.msk.bf16.mxu0 %vm660_vm1, %v526_v8 }
   0x9   :  { %14 = vsyncpa [#allocation4], 0  ;;  %v227_v17 = vld [vmem:[%s819_s4] sm:$0xff]  ;;  %v35_v18 = vld [vmem:[%s815_s0 + $0x30] sm:$0xff]  ;;  %vm251_vm2 = vcmask 261120  }
   0xa   :  { %70 = vperm.xlu1 %579, %v52_v16   ;;  %v36_v19 = vld [vmem:[%s815_s0 + $0x38] sm:$0xff]  ;;  %v228_v20 = vld [vmem:[%s819_s4 + $0x8] sm:$0xff]  ;;  %v229_v22 = vld [vmem:[%s819_s4 + $0x10] sm:$0xff] }
   0xb   :  { %60 = vperm.xlu0 %578, %v50_v15   ;;  %v538_v21 = vpack.c.bf16 %v36_v19, %v35_v18  ;;  %v230_v23 = vld [vmem:[%s819_s4 + $0x18] sm:$0xff]  ;;  %v353_v24 = vld [vmem:[%s820_s5] sm:$0xff]  ;;  %v38_v26 = vld [vmem:[%s815_s0 + $0x48] sm:$0xff] }
   0xc   :  { %v37_v25 = vld [vmem:[%s815_s0 + $0x40] sm:$0xff]  ;;  %v354_v27 = vld [vmem:[%s820_s5 + $0x8] sm:$0xff]  ;;  %v355_v29 = vld [vmem:[%s820_s5 + $0x10] sm:$0xff] }
   0xd   :  { %v544_v28 = vpack.c.bf16 %v38_v26, %v37_v25  ;;  %v356_v30 = vld [vmem:[%s820_s5 + $0x18] sm:$0xff]  ;;  %v390_v31 = vld [vmem:[#allocation2] sm:$0x1]  ;;  %v39_v32 = vld [vmem:[%s815_s0 + $0x50] sm:$0xff] }
   0xe   :  { %238 = vperm.xlu1 %579, %v228_v20   ;;  %v40_v33 = vld [vmem:[%s815_s0 + $0x58] sm:$0xff]  ;;  %v41_v35 = vld [vmem:[%s815_s0 + $0x60] sm:$0xff]  ;;  %v42_v36 = vld [vmem:[%s815_s0 + $0x68] sm:$0xff] }
   0xf   :  { %531 = vmatpush3.bf16.xpose.msk.msra.mxu0 %vm660_vm1, %v526_v8  ;;  %233 = vperm.xlu0 %578, %v227_v17   ;;  %v550_v34 = vpack.c.bf16 %v40_v33, %v39_v32  ;;  %v556_v37 = vpack.c.bf16 %v42_v36, %v41_v35  ;;  %v43_v38 = vld [vmem:[%s815_s0 + $0x70] sm:$0xff]  ;;  %v44_v39 = vld [vmem:[%s815_s0 + $0x78] sm:$0xff]  ;;  %v46_v41 = vld [vmem:[%s816_s1 + $0x8] sm:$0xff] }
  0x10   :  { %534 = vmatprep.subr.msk.bf16.mxu0 %vm660_vm1, %v532_v14  ;;  %v562_v40 = vpack.c.bf16 %v44_v39, %v43_v38  ;;  %v47_v42 = vld [vmem:[%s816_s1 + $0x10] sm:$0xff]  ;;  %v48_v43 = vld [vmem:[%s816_s1 + $0x18] sm:$0xff]  ;;  %v223_v44 = vld [vmem:[%s818_s3] sm:$0xff] }
  0x11   :  { %514 = vmatprep.mubr.msk.f32.mxu1 %vm251_vm2, %v223_v44  ;;  %v224_v63 = vld [vmem:[%s818_s3 + $0x8] sm:$0xff]  ;;  %v225_v0 = vld [vmem:[%s818_s3 + $0x10] sm:$0xff]  ;;  %v226_v1 = vld [vmem:[%s818_s3 + $0x18] sm:$0xff]  ;;  %s605_s3 = smov [#allocation3]  }
  0x12   :  { %248 = vperm.xlu1 %579, %v230_v23   ;;  %s408_s19 = sshll.u32 %s605_s3, 4  ;;  %s409_s19 = int_to_ptr.vmem [resolvable:$true] %s408_s19 }
  0x13   :  { %243 = vperm.xlu0 %578, %v229_v22   ;;  %s580_s20 = scalar_lea.vmem %s409_s19, 16  ;;  %s584_s21 = scalar_lea.vmem %s409_s19, 32 }
  0x14   :  { %p581_p0 = scmp.ne.s32.totalorder %s409_s19, %s580_s20  ;;  %p585_p1 = scmp.lt.s32.totalorder %s409_s19, %s409_s19 }
  0x15   :  { %p586_p2 = scmp.lt.s32.totalorder %s584_s21, %s580_s20 }
  0x16   :  { %364 = vperm.xlu1 %579, %v354_v27  }
  0x17   :  { %537 = vmatpush3.bf16.xpose.msk.msra.mxu0 %vm660_vm1, %v532_v14  ;;  %359 = vperm.xlu0 %578, %v353_v24   ;;  %p587_p3 = por %p586_p2, %p585_p1 }
  0x18   :  { %540 = vmatprep.subr.msk.bf16.mxu0 %vm660_vm1, %v538_v21 }
  0x19   :  { %p588_p4 = pnand %p587_p3, %p581_p0 }
  0x1a   :  { %374 = vperm.xlu1 %579, %v356_v30  }
  0x1b   :  { %369 = vperm.xlu0 %578, %v355_v29  }
  0x1f   :  { %543 = vmatpush3.bf16.xpose.msk.msra.mxu0 %vm660_vm1, %v538_v21  ;;  %393 = vperm.xlu0 %578, %v390_v31  }
  0x20   :  { %546 = vmatprep.subr.msk.bf16.mxu0 %vm660_vm1, %v544_v28 }
  0x27   :  { %549 = vmatpush3.bf16.xpose.msk.msra.mxu0 %vm660_vm1, %v544_v28  ;;  %v396_v28 = vlaneseq }
  0x28   :  { %552 = vmatprep.subr.msk.bf16.mxu0 %vm660_vm1, %v550_v34 }
  0x29   :  { %v397_v31 = vshrl.u32 %v396_v28, 7 }
  0x2f   :  { %555 = vmatpush3.bf16.xpose.msk.msra.mxu0 %vm660_vm1, %v550_v34  ;;  %v398_v34 = vsub.s32 0, %v397_v31 }
  0x30   :  { %558 = vmatprep.subr.msk.bf16.mxu0 %vm660_vm1, %v556_v37 }
  0x37   :  { %561 = vmatpush3.bf16.xpose.msk.msra.mxu0 %vm660_vm1, %v556_v37 }
  0x38   :  { %564 = vmatprep.subr.msk.bf16.mxu0 %vm660_vm1, %v562_v40 }
  0x3f   :  { %567 = vmatpush3.bf16.xpose.msk.msra.mxu0 %vm660_vm1, %v562_v40 }
  0x46   :  { %501 = vmatmul.mubr.msk.f32.vlgmr.msra.gmra.mrb[0].mxu0 %vm73_vm0, %v46_v41 }
  0x47   :  { %503 = vmatprep.mubr.msk.f32.mxu0 %vm73_vm0, %v47_v42 }
  0x4a   :  { %504 = vmatmul.mubr.msk.f32.gmra.mrb[2].mxu0 %vm73_vm0, %v48_v43 }
  0x85   :  { %v66_v46 = vpop.permute.xlu1 %65 }
  0x86   :  { %v56_v45 = vpop.permute.xlu0 %55 }
  0x89   :  { %v71_v53 = vpop.permute.xlu1 %70 }
  0x8a   :  { %v61_v47 = vpop.permute.xlu0 %60 }
  0x8d   :  { %v239_v3 = vpop.permute.xlu1 %238 }
  0x8e   :  { %v234_v2 = vpop.permute.xlu0 %233 }
  0x91   :  { %v249_v5 = vpop.permute.xlu1 %248 }
  0x92   :  { %v244_v4 = vpop.permute.xlu0 %243 }
  0x95   :  { %v365_v12 = vpop.permute.xlu1 %364 }
  0x96   :  { %v360_v10 = vpop.permute.xlu0 %359 }
  0x99   :  { %v375_v25 = vpop.permute.xlu1 %374 }
  0x9a   :  { %v370_v23 = vpop.permute.xlu0 %369 }
  0x9e   :  { %v394_v36 = vpop.permute.xlu0 %393 }
  0x9f   :  { %v399_v38 = vrot.slane %v394_v36, %v398_v34 }
 0x119   :  { %v502_v48 = vpop.f32.mrb[0].mxu0 }
 0x11a   :  { %v206_v49 = vadd.f32 %v502_v48, %v61_v47  ;;  %v200_v50 = vpop.f32.mrb[1].mxu0 }
 0x11b   :  { %v201_v51 = vadd.f32 %v200_v50, %v56_v45 }
 0x11c   :  { %v220_v52 = vmax.f32 %v206_v49, 0.0 }
 0x11d   :  { %v219_v54 = vmax.f32 %v201_v51, 0.0  ;;  %v505_v55 = vpop.f32.mrb[2].mxu0 }
 0x11e   :  { %v216_v56 = vadd.f32 %v505_v55, %v71_v53  ;;  %v210_v57 = vpop.f32.mrb[3].mxu0 }
 0x11f   :  { %v211_v58 = vadd.f32 %v210_v57, %v66_v46  ;;  %v568_v59 = vpack.c.bf16 %v220_v52, %v219_v54 }
 0x120   :  { %v222_v60 = vmax.f32 %v216_v56, 0.0 }
 0x121   :  { %v221_v61 = vmax.f32 %v211_v58, 0.0  ;;  %569 = vmatprep.subr.bf16.mxu1 %v568_v59 }
 0x122   :  { %571 = vmatpush3.bf16.msra.mxu1 %v568_v59 }
 0x123   :  { %v572_v62 = vpack.c.bf16 %v222_v60, %v221_v61 }
 0x125   :  { %573 = vmatprep.subr.bf16.mxu1 %v572_v62 }
 0x126   :  { %575 = vmatpush3.bf16.msra.mxu1 %v572_v62 }
 0x129   :  { %515 = vmatmul.mubr.msk.f32.vlgmr.msra.gmra.mrb[0].mxu1 %vm251_vm2, %v224_v63 }
 0x12a   :  { %517 = vmatprep.mubr.msk.f32.mxu1 %vm251_vm2, %v225_v0 }
 0x12d   :  { %518 = vmatmul.mubr.msk.f32.gmra.mrb[2].mxu1 %vm251_vm2, %v226_v1 }
 0x1fc   :  { %v516_v6 = vpop.f32.mrb[0].mxu1 }
 0x1fd   :  { %v336_v7 = vadd.f32 %v516_v6, %v239_v3  ;;  %v330_v8 = vpop.f32.mrb[1].mxu1 }
 0x1fe   :  { %v331_v9 = vadd.f32 %v330_v8, %v234_v2 }
 0x1ff   :  { %v350_v11 = vmax.f32 %v336_v7, 0.0 }
 0x200   :  { %v349_v13 = vmax.f32 %v331_v9, 0.0  ;;  %v519_v14 = vpop.f32.mrb[2].mxu1 }
 0x201   :  { %v378_v15 = vmul.f32 %v365_v12, %v350_v11  ;;  %v346_v16 = vadd.f32 %v519_v14, %v249_v5  ;;  %v340_v17 = vpop.f32.mrb[3].mxu1 }
 0x202   :  { %v377_v18 = vmul.f32 %v360_v10, %v349_v13  ;;  %v341_v19 = vadd.f32 %v340_v17, %v244_v4 }
 0x203   :  { %v352_v21 = vmax.f32 %v346_v16, 0.0 }
 0x204   :  { %v381_v20 = vadd.f32 %v378_v15, %v377_v18  ;;  %v351_v22 = vmax.f32 %v341_v19, 0.0 }
 0x205   :  { %v380_v26 = vmul.f32 %v375_v25, %v352_v21 }
 0x206   :  { %v379_v24 = vmul.f32 %v370_v23, %v351_v22 }
 0x208   :  { %v382_v27 = vadd.f32 %v381_v20, %v379_v24 }
 0x20a   :  { %v383_v29 = vadd.f32 %v382_v27, %v380_v26 }
 0x20c   :  { %v384_v30 = vrot.slane %v383_v29, 4 }
 0x20e   :  { %v385_v32 = vadd.f32 %v384_v30, %v383_v29 }
 0x210   :  { %v386_v33 = vrot.slane %v385_v32, 2 }
 0x212   :  { %v387_v35 = vadd.f32 %v386_v33, %v385_v32 }
 0x214   :  { %v388_v37 = vrot.slane %v387_v35, 1 }
 0x216   :  { %v389_v39 = vadd.f32 %v388_v37, %v387_v35 }
 0x218   :  { %v400_v40 = vadd.f32 %v399_v38, %v389_v39 }
 0x21a   :  { %401 = vst [vmem:[#allocation3] sm:$0x1] %v400_v40 }
 0x21b   :  { %591 = shalt.err (!%p588_p4)
}
 0x21c   :  { %s592_s24 = scalar_lea.hbm %s822_s7, 16 }
 0x21d   :  { %p593_p5 = scmp.ne.s32.totalorder %s822_s7, %s592_s24  ;;  %p596_p6 = scmp.lt.u32.totalorder %s592_s24, %s822_s7 }
 0x21f   :  { %p598_p7 = pnand %p596_p6, %p593_p5 }
 0x221   :  { %601 = shalt.err (!%p598_p7)
}
 0x222   :  { %411 = dma.vmem_to_hbm [thread:$0]  %s409_s19, 16, %s822_s7, [#allocation4]  }
 0x223   :  { %602 = dma.done.wait [#allocation4], 16  }
 0x224   :  { %603 = vsyncadd [#allocation4], 4294967280 }
 0x225   :  { %415 = vsyncpa [#allocation4], 1 }

// kernel: tpu_custom_call.1
= control target key start
LH: loop header
LB: loop body
LE: loop exit
PB: predicated region body
PF: predicated region fallthrough
CT: control target
= control target key end

     0   :  { %s815_s0 = inlined_call_operand.vmem [shape: f32[128,16], index: 0, kind: input, shape index: {}]   ;;  %s816_s1 = inlined_call_operand.vmem [shape: f32[32,16], index: 1, kind: input, shape index: {}]   ;;  %s817_s2 = inlined_call_operand.vmem [shape: f32[32,1], index: 2, kind: input, shape index: {}]   ;;  %s818_s3 = inlined_call_operand.vmem [shape: f32[32,32], index: 3, kind: input, shape index: {}]   ;;  %s819_s4 = inlined_call_operand.vmem [shape: f32[32,1], index: 4, kind: input, shape index: {}]   ;;  %s820_s5 = inlined_call_operand.vmem [shape: f32[32,1], index: 5, kind: input, shape index: {}]   ;;  %s821_s6 = inlined_call_operand.<no memory space> [shape: f32[1,1], index: 6, kind: input, shape index: {}]   ;;  %s822_s7 = inlined_call_operand.hbm [shape: f32[1,128], index: 7, kind: output, shape index: {}]  }
   0x1   :  { %v12_v0 = vstv %s821_s6 }
   0x2   :  { %13 = vst [vmem:[#allocation2] sm:$0x1] %v12_v0 }
   0x3   :  { %v29_v1 = vld [vmem:[%s815_s0] sm:$0xff]  ;;  %v30_v2 = vld [vmem:[%s815_s0 + $0x8] sm:$0xff]  ;;  %vm73_vm0 = vcmask 130048   ;;  %v31_v3 = vld [vmem:[%s815_s0 + $0x10] sm:$0xff]  ;;  %v604_v7 = vmov 0  }
   0x4   :  { %v520_v4 = vpack.c.bf16 %v30_v2, %v29_v1  ;;  %vm660_vm1 = vmpackc.low %vm73_vm0, %vm73_vm0  ;;  %v32_v6 = vld [vmem:[%s815_s0 + $0x18] sm:$0xff]  ;;  %578 = vset.pattern.permute.xlu0 %v604_v7  ;;  %579 = vset.pattern.permute.xlu1 %v604_v7  ;;  %v45_v9 = vld [vmem:[%s816_s1] sm:$0xff] }
   0x5   :  { %v526_v8 = vpack.c.bf16 %v32_v6, %v31_v3  ;;  %v33_v10 = vld [vmem:[%s815_s0 + $0x20] sm:$0xff]  ;;  %v34_v11 = vld [vmem:[%s815_s0 + $0x28] sm:$0xff]  ;;  %500 = vmatprep.mubr.msk.f32.mxu0 %vm73_vm0, %v45_v9  ;;  %v51_v13 = vld [vmem:[%s817_s2 + $0x10] sm:$0xff] }
   0x6   :  { %522 = vmatprep.subr.msk.bf16.mxu0 %vm660_vm1, %v520_v4  ;;  %v49_v12 = vld [vmem:[%s817_s2] sm:$0xff]  ;;  %65 = vperm.xlu1 %579, %v51_v13   ;;  %v532_v14 = vpack.c.bf16 %v34_v11, %v33_v10  ;;  %v50_v15 = vld [vmem:[%s817_s2 + $0x8] sm:$0xff]  ;;  %v52_v16 = vld [vmem:[%s817_s2 + $0x18] sm:$0xff] }
   0x7   :  { %525 = vmatpush3.bf16.xpose.msk.msra.mxu0 %vm660_vm1, %v520_v4  ;;  %55 = vperm.xlu0 %578, %v49_v12  }
   0x8   :  { %528 = vmatprep.subr.msk.bf16.mxu0 %vm660_vm1, %v526_v8 }
   0x9   :  { %14 = vsyncpa [#allocation4], 0  ;;  %v227_v17 = vld [vmem:[%s819_s4] sm:$0xff]  ;;  %v35_v18 = vld [vmem:[%s815_s0 + $0x30] sm:$0xff]  ;;  %vm251_vm2 = vcmask 261120  }
   0xa   :  { %70 = vperm.xlu1 %579, %v52_v16   ;;  %v36_v19 = vld [vmem:[%s815_s0 + $0x38] sm:$0xff]  ;;  %v228_v20 = vld [vmem:[%s819_s4 + $0x8] sm:$0xff]  ;;  %v229_v22 = vld [vmem:[%s819_s4 + $0x10] sm:$0xff] }
   0xb   :  { %60 = vperm.xlu0 %578, %v50_v15   ;;  %v538_v21 = vpack.c.bf16 %v36_v19, %v35_v18  ;;  %v230_v23 = vld [vmem:[%s819_s4 + $0x18] sm:$0xff]  ;;  %v353_v24 = vld [vmem:[%s820_s5] sm:$0xff]  ;;  %v38_v26 = vld [vmem:[%s815_s0 + $0x48] sm:$0xff] }
   0xc   :  { %v37_v25 = vld [vmem:[%s815_s0 + $0x40] sm:$0xff]  ;;  %v354_v27 = vld [vmem:[%s820_s5 + $0x8] sm:$0xff]  ;;  %v355_v29 = vld [vmem:[%s820_s5 + $0x10] sm:$0xff] }
   0xd   :  { %v544_v28 = vpack.c.bf16 %v38_v26, %v37_v25  ;;  %v356_v30 = vld [vmem:[%s820_s5 + $0x18] sm:$0xff]  ;;  %v390_v31 = vld [vmem:[#allocation2] sm:$0x1]  ;;  %v39_v32 = vld [vmem:[%s815_s0 + $0x50] sm:$0xff] }
   0xe   :  { %238 = vperm.xlu1 %579, %v228_v20   ;;  %v40_v33 = vld [vmem:[%s815_s0 + $0x58] sm:$0xff]  ;;  %v41_v35 = vld [vmem:[%s815_s0 + $0x60] sm:$0xff]  ;;  %v42_v36 = vld [vmem:[%s815_s0 + $0x68] sm:$0xff] }
   0xf   :  { %531 = vmatpush3.bf16.xpose.msk.msra.mxu0 %vm660_vm1, %v526_v8  ;;  %233 = vperm.xlu0 %578, %v227_v17   ;;  %v550_v34 = vpack.c.bf16 %v40_v33, %v39_v32  ;;  %v556_v37 = vpack.c.bf16 %v42_v36, %v41_v35  ;;  %v43_v38 = vld [vmem:[%s815_s0 + $0x70] sm:$0xff]  ;;  %v44_v39 = vld [vmem:[%s815_s0 + $0x78] sm:$0xff]  ;;  %v46_v41 = vld [vmem:[%s816_s1 + $0x8] sm:$0xff] }
  0x10   :  { %534 = vmatprep.subr.msk.bf16.mxu0 %vm660_vm1, %v532_v14  ;;  %v562_v40 = vpack.c.bf16 %v44_v39, %v43_v38  ;;  %v47_v42 = vld [vmem:[%s816_s1 + $0x10] sm:$0xff]  ;;  %v48_v43 = vld [vmem:[%s816_s1 + $0x18] sm:$0xff]  ;;  %v223_v44 = vld [vmem:[%s818_s3] sm:$0xff] }
  0x11   :  { %514 = vmatprep.mubr.msk.f32.mxu1 %vm251_vm2, %v223_v44  ;;  %v224_v63 = vld [vmem:[%s818_s3 + $0x8] sm:$0xff]  ;;  %v225_v0 = vld [vmem:[%s818_s3 + $0x10] sm:$0xff]  ;;  %v226_v1 = vld [vmem:[%s818_s3 + $0x18] sm:$0xff]  ;;  %s605_s3 = smov [#allocation3]  }
  0x12   :  { %248 = vperm.xlu1 %579, %v230_v23   ;;  %s408_s19 = sshll.u32 %s605_s3, 4  ;;  %s409_s19 = int_to_ptr.vmem [resolvable:$true] %s408_s19 }
  0x13   :  { %243 = vperm.xlu0 %578, %v229_v22   ;;  %s580_s20 = scalar_lea.vmem %s409_s19, 16  ;;  %s584_s21 = scalar_lea.vmem %s409_s19, 32 }
  0x14   :  { %p581_p0 = scmp.ne.s32.totalorder %s409_s19, %s580_s20  ;;  %p585_p1 = scmp.lt.s32.totalorder %s409_s19, %s409_s19 }
  0x15   :  { %p586_p2 = scmp.lt.s32.totalorder %s584_s21, %s580_s20 }
  0x16   :  { %364 = vperm.xlu1 %579, %v354_v27  }
  0x17   :  { %537 = vmatpush3.bf16.xpose.msk.msra.mxu0 %vm660_vm1, %v532_v14  ;;  %359 = vperm.xlu0 %578, %v353_v24   ;;  %p587_p3 = por %p586_p2, %p585_p1 }
  0x18   :  { %540 = vmatprep.subr.msk.bf16.mxu0 %vm660_vm1, %v538_v21 }
  0x19   :  { %p588_p4 = pnand %p587_p3, %p581_p0 }
  0x1a   :  { %374 = vperm.xlu1 %579, %v356_v30  }
  0x1b   :  { %369 = vperm.xlu0 %578, %v355_v29  }
  0x1f   :  { %543 = vmatpush3.bf16.xpose.msk.msra.mxu0 %vm660_vm1, %v538_v21  ;;  %393 = vperm.xlu0 %578, %v390_v31  }
  0x20   :  { %546 = vmatprep.subr.msk.bf16.mxu0 %vm660_vm1, %v544_v28 }
  0x27   :  { %549 = vmatpush3.bf16.xpose.msk.msra.mxu0 %vm660_vm1, %v544_v28  ;;  %v396_v28 = vlaneseq }
  0x28   :  { %552 = vmatprep.subr.msk.bf16.mxu0 %vm660_vm1, %v550_v34 }
  0x29   :  { %v397_v31 = vshrl.u32 %v396_v28, 7 }
  0x2f   :  { %555 = vmatpush3.bf16.xpose.msk.msra.mxu0 %vm660_vm1, %v550_v34  ;;  %v398_v34 = vsub.s32 0, %v397_v31 }
  0x30   :  { %558 = vmatprep.subr.msk.bf16.mxu0 %vm660_vm1, %v556_v37 }
  0x37   :  { %561 = vmatpush3.bf16.xpose.msk.msra.mxu0 %vm660_vm1, %v556_v37 }
  0x38   :  { %564 = vmatprep.subr.msk.bf16.mxu0 %vm660_vm1, %v562_v40 }
  0x3f   :  { %567 = vmatpush3.bf16.xpose.msk.msra.mxu0 %vm660_vm1, %v562_v40 }
  0x46   :  { %501 = vmatmul.mubr.msk.f32.vlgmr.msra.gmra.mrb[0].mxu0 %vm73_vm0, %v46_v41 }
  0x47   :  { %503 = vmatprep.mubr.msk.f32.mxu0 %vm73_vm0, %v47_v42 }
  0x4a   :  { %504 = vmatmul.mubr.msk.f32.gmra.mrb[2].mxu0 %vm73_vm0, %v48_v43 }
  0x85   :  { %v66_v46 = vpop.permute.xlu1 %65 }
  0x86   :  { %v56_v45 = vpop.permute.xlu0 %55 }
  0x89   :  { %v71_v53 = vpop.permute.xlu1 %70 }
  0x8a   :  { %v61_v47 = vpop.permute.xlu0 %60 }
  0x8d   :  { %v239_v3 = vpop.permute.xlu1 %238 }
  0x8e   :  { %v234_v2 = vpop.permute.xlu0 %233 }
  0x91   :  { %v249_v5 = vpop.permute.xlu1 %248 }
  0x92   :  { %v244_v4 = vpop.permute.xlu0 %243 }
  0x95   :  { %v365_v12 = vpop.permute.xlu1 %364 }
  0x96   :  { %v360_v10 = vpop.permute.xlu0 %359 }
  0x99   :  { %v375_v25 = vpop.permute.xlu1 %374 }
  0x9a   :  { %v370_v23 = vpop.permute.xlu0 %369 }
  0x9e   :  { %v394_v36 = vpop.permute.xlu0 %393 }
  0x9f   :  { %v399_v38 = vrot.slane %v394_v36, %v398_v34 }
 0x119   :  { %v502_v48 = vpop.f32.mrb[0].mxu0 }
 0x11a   :  { %v206_v49 = vadd.f32 %v502_v48, %v61_v47  ;;  %v200_v50 = vpop.f32.mrb[1].mxu0 }
 0x11b   :  { %v201_v51 = vadd.f32 %v200_v50, %v56_v45 }
 0x11c   :  { %v220_v52 = vmax.f32 %v206_v49, 0.0 }
 0x11d   :  { %v219_v54 = vmax.f32 %v201_v51, 0.0  ;;  %v505_v55 = vpop.f32.mrb[2].mxu0 }
 0x11e   :  { %v216_v56 = vadd.f32 %v505_v55, %v71_v53  ;;  %v210_v57 = vpop.f32.mrb[3].mxu0 }
 0x11f   :  { %v211_v58 = vadd.f32 %v210_v57, %v66_v46  ;;  %v568_v59 = vpack.c.bf16 %v220_v52, %v219_v54 }
 0x120   :  { %v222_v60 = vmax.f32 %v216_v56, 0.0 }
 0x121   :  { %v221_v61 = vmax.f32 %v211_v58, 0.0  ;;  %569 = vmatprep.subr.bf16.mxu1 %v568_v59 }
 0x122   :  { %571 = vmatpush3.bf16.msra.mxu1 %v568_v59 }
 0x123   :  { %v572_v62 = vpack.c.bf16 %v222_v60, %v221_v61 }
 0x125   :  { %573 = vmatprep.subr.bf16.mxu1 %v572_v62 }
 0x126   :  { %575 = vmatpush3.bf16.msra.mxu1 %v572_v62 }
 0x129   :  { %515 = vmatmul.mubr.msk.f32.vlgmr.msra.gmra.mrb[0].mxu1 %vm251_vm2, %v224_v63 }
 0x12a   :  { %517 = vmatprep.mubr.msk.f32.mxu1 %vm251_vm2, %v225_v0 }
 0x12d   :  { %518 = vmatmul.mubr.msk.f32.gmra.mrb[2].mxu1 %vm251_vm2, %v226_v1 }
 0x1fc   :  { %v516_v6 = vpop.f32.mrb[0].mxu1 }
 0x1fd   :  { %v336_v7 = vadd.f32 %v516_v6, %v239_v3  ;;  %v330_v8 = vpop.f32.mrb[1].mxu1 }
 0x1fe   :  { %v331_v9 = vadd.f32 %v330_v8, %v234_v2 }
 0x1ff   :  { %v350_v11 = vmax.f32 %v336_v7, 0.0 }
 0x200   :  { %v349_v13 = vmax.f32 %v331_v9, 0.0  ;;  %v519_v14 = vpop.f32.mrb[2].mxu1 }
 0x201   :  { %v378_v15 = vmul.f32 %v365_v12, %v350_v11  ;;  %v346_v16 = vadd.f32 %v519_v14, %v249_v5  ;;  %v340_v17 = vpop.f32.mrb[3].mxu1 }
 0x202   :  { %v377_v18 = vmul.f32 %v360_v10, %v349_v13  ;;  %v341_v19 = vadd.f32 %v340_v17, %v244_v4 }
 0x203   :  { %v352_v21 = vmax.f32 %v346_v16, 0.0 }
 0x204   :  { %v381_v20 = vadd.f32 %v378_v15, %v377_v18  ;;  %v351_v22 = vmax.f32 %v341_v19, 0.0 }
 0x205   :  { %v380_v26 = vmul.f32 %v375_v25, %v352_v21 }
 0x206   :  { %v379_v24 = vmul.f32 %v370_v23, %v351_v22 }
 0x208   :  { %v382_v27 = vadd.f32 %v381_v20, %v379_v24 }
 0x20a   :  { %v383_v29 = vadd.f32 %v382_v27, %v380_v26 }
 0x20c   :  { %v384_v30 = vrot.slane %v383_v29, 4 }
 0x20e   :  { %v385_v32 = vadd.f32 %v384_v30, %v383_v29 }
 0x210   :  { %v386_v33 = vrot.slane %v385_v32, 2 }
 0x212   :  { %v387_v35 = vadd.f32 %v386_v33, %v385_v32 }
 0x214   :  { %v388_v37 = vrot.slane %v387_v35, 1 }
 0x216   :  { %v389_v39 = vadd.f32 %v388_v37, %v387_v35 }
 0x218   :  { %v400_v40 = vadd.f32 %v399_v38, %v389_v39 }
 0x21a   :  { %401 = vst [vmem:[#allocation3] sm:$0x1] %v400_v40 }
 0x21b   :  { %591 = shalt.err (!%p588_p4)
}
 0x21c   :  { %s592_s24 = scalar_lea.hbm %s822_s7, 16 }
 0x21d   :  { %p593_p5 = scmp.ne.s32.totalorder %s822_s7, %s592_s24  ;;  %p596_p6 = scmp.lt.u32.totalorder %s592_s24, %s822_s7 }
 0x21f   :  { %p598_p7 = pnand %p596_p6, %p593_p5 }
 0x221   :  { %601 = shalt.err (!%p598_p7)
}
 0x222   :  { %411 = dma.vmem_to_hbm [thread:$0]  %s409_s19, 16, %s822_s7, [#allocation4]  }
 0x223   :  { %602 = dma.done.wait [#allocation4], 16  }
 0x224   :  { %603 = vsyncadd [#allocation4], 4294967280 }
 0x225   :  { %415 = vsyncpa [#allocation4], 1 }

</bundles_post_ra>
